<compile_context>
chip_gen: v7x
topology: tpu7x:2x2x1
jax: 0.10.0
libtpu: 0.0.40
codegen_flags: <defaults>
</compile_context>

<pallas_src>
import jax
import jax.numpy as jnp
from jax.experimental import pallas as pl
from jax.experimental.pallas import tpu as pltpu


def _round_up(x, m):
    return (x + m - 1) // m * m


# ---------------------------------------------------------------------------
# Pass 1: per-feature batch statistics (sum and sum of squares).
# ---------------------------------------------------------------------------
def _stats_kernel(x_ref, sum_ref, sumsq_ref):
    @pl.when(pl.program_id(0) == 0)
    def _init():
        sum_ref[...] = jnp.zeros_like(sum_ref)
        sumsq_ref[...] = jnp.zeros_like(sumsq_ref)

    x = x_ref[...].astype(jnp.float32)                       # (tile_b, 128)
    sum_ref[...] += jnp.sum(x, axis=0, keepdims=True)        # (1, 128)
    sumsq_ref[...] += jnp.sum(x * x, axis=0, keepdims=True)  # (1, 128)


# ---------------------------------------------------------------------------
# Pass 2: normalize -> fc1 -> (ReLU_Poly ~ square) -> fc2, lane-dense output.
# ---------------------------------------------------------------------------
def _detector_kernel(x_ref, mean_ref, istd_ref, w1_ref, b1_ref, w2_ref, b2_ref, o_ref):
    x = x_ref[...].astype(jnp.float32)                       # (tile_b, 128)

    # x = (x - mean) * inv_std  (inv_std precomputed with one rsqrt on a (1,128) row)
    xn = (x - mean_ref[...]) * istd_ref[...]

    # fc1: bf16 operands, f32 accumulation on the MXU.
    z1 = jnp.dot(xn.astype(jnp.bfloat16), w1_ref[...],
                 preferred_element_type=jnp.float32) + b1_ref[...]

    # TODO(synk): ReLU_Poly is not defined in the provided source; assuming the common
    #             polynomial (square) activation z^2 used in HE-style detectors.
    z2 = z1 * z1

    # fc2 into the 128-lane padded head (padded columns are zero, sliced off outside).
    out = jnp.dot(z2.astype(jnp.bfloat16), w2_ref[...],
                  preferred_element_type=jnp.float32) + b2_ref[...]
    o_ref[...] = out.astype(o_ref.dtype)


# ---------------------------------------------------------------------------
# Wrapper
# ---------------------------------------------------------------------------
def resnet_detector_forward(x, w1, b1, w2, b2):
    """x: (B, 128) float32. w1: (128, 64), b1: (1, 64), w2: (64, C), b2: (1, C).
    Returns (B, C) float32. Requires B > 1 (unbiased std, as in torch)."""
    B, F = x.shape
    H = w1.shape[1]
    n_classes = w2.shape[1]
    N_pad = _round_up(max(n_classes, 1), 128)            # lane-dense output width
    VMEM_LIMIT = 32 * 1024 * 1024

    # ---- lane-dense / bf16 weight prep (outside the kernel, done once) ----
    w1b = w1.astype(jnp.bfloat16)                                          # (128, 64)
    b1r = b1.reshape(1, H).astype(jnp.float32)                             # (1, 64)
    w2p = jnp.zeros((H, N_pad), jnp.bfloat16).at[:, :n_classes].set(
        w2.astype(jnp.bfloat16))                                           # (64, 128)
    b2p = jnp.zeros((1, N_pad), jnp.float32).at[:, :n_classes].set(
        b2.reshape(1, n_classes).astype(jnp.float32))                      # (1, 128)

    # ---- batch tiling: <=1024 rows/tile, (8,128)-aligned, zero-pad tail rows ----
    TILE_B_MAX = 1024
    Bp = _round_up(B, 8)
    if Bp <= TILE_B_MAX:
        tile_b = Bp
    else:
        tile_b = TILE_B_MAX
        Bp = _round_up(B, tile_b)
    nb = Bp // tile_b
    xp = jnp.pad(x, ((0, Bp - B), (0, 0))) if Bp != B else x

    # ---- pass 1: batch statistics (zero-padded rows contribute 0 to both sums) ----
    s, ss = pl.pallas_call(
        _stats_kernel,
        out_shape=(jax.ShapeDtypeStruct((1, F), jnp.float32),
                   jax.ShapeDtypeStruct((1, F), jnp.float32)),
        grid=(nb,),
        in_specs=[pl.BlockSpec((tile_b, F), lambda i: (i, 0))],
        out_specs=(pl.BlockSpec((1, F), lambda i: (0, 0)),
                   pl.BlockSpec((1, F), lambda i: (0, 0))),
        compiler_params=pltpu.CompilerParams(
            dimension_semantics=("arbitrary",),       # accumulator across batch tiles
            vmem_limit_bytes=VMEM_LIMIT),
        cost_estimate=pl.CostEstimate(
            flops=3 * Bp * F, transcendentals=0,
            bytes_accessed=Bp * F * 4 + 2 * F * 4),
    )(xp)

    # Tiny (1,128) math: mean, unbiased var = (sum(x^2) - B*mean^2)/(B-1), one rsqrt.
    # No epsilon, matching torch (a zero-variance feature gives inf, same as the module).
    Bf = jnp.float32(B)
    mean = s / Bf
    var = (ss - Bf * mean * mean) / (Bf - 1.0)
    inv_std = jax.lax.rsqrt(var)

    # ---- pass 2: normalize + fc1 + square + fc2 (batch-parallel) ----
    out_p = pl.pallas_call(
        _detector_kernel,
        out_shape=jax.ShapeDtypeStruct((Bp, N_pad), jnp.float32),
        grid=(nb,),
        in_specs=[
            pl.BlockSpec((tile_b, F), lambda i: (i, 0)),   # x tile
            pl.BlockSpec((1, F), lambda i: (0, 0)),        # mean     (resident)
            pl.BlockSpec((1, F), lambda i: (0, 0)),        # inv_std  (resident)
            pl.BlockSpec((F, H), lambda i: (0, 0)),        # w1 bf16  (resident)
            pl.BlockSpec((1, H), lambda i: (0, 0)),        # b1       (resident)
            pl.BlockSpec((H, N_pad), lambda i: (0, 0)),    # w2 padded bf16 (resident)
            pl.BlockSpec((1, N_pad), lambda i: (0, 0)),    # b2 padded      (resident)
        ],
        out_specs=pl.BlockSpec((tile_b, N_pad), lambda i: (i, 0)),
        compiler_params=pltpu.CompilerParams(
            dimension_semantics=("parallel",),         # independent batch tiles (v7x 2 TCs)
            vmem_limit_bytes=VMEM_LIMIT),
        cost_estimate=pl.CostEstimate(
            flops=Bp * (2 * F * H + 2 * H * N_pad + 3 * F + H),
            transcendentals=0,
            bytes_accessed=(Bp * F * 4 + Bp * N_pad * 4
                            + F * H * 2 + H * N_pad * 2 + (H + N_pad + 2 * F) * 4)),
    )(xp, mean, inv_std, w1b, b1r, w2p, b2p)

    return out_p[:B, :n_classes]


def init_params(key, n_classes):
    """Deterministic init mimicking nn.Linear's U(-1/sqrt(fan_in), 1/sqrt(fan_in))."""
    k1, k2, k3, k4 = jax.random.split(key, 4)
    lim1 = 1.0 / jnp.sqrt(128.0)
    lim2 = 1.0 / jnp.sqrt(64.0)
    w1 = jax.random.uniform(k1, (128, 64), jnp.float32, -lim1, lim1)
    b1 = jax.random.uniform(k2, (1, 64), jnp.float32, -lim1, lim1)
    w2 = jax.random.uniform(k3, (64, n_classes), jnp.float32, -lim2, lim2)
    b2 = jax.random.uniform(k4, (1, n_classes), jnp.float32, -lim2, lim2)
    return w1, b1, w2, b2


if __name__ == "__main__":
    key = jax.random.PRNGKey(0)
    kx, kp = jax.random.split(key)

    B, n_classes = 8, 4
    x = jax.random.normal(kx, (B, 128), jnp.float32)
    w1, b1, w2, b2 = init_params(kp, n_classes)

    out = resnet_detector_forward(x, w1, b1, w2, b2)
    jax.block_until_ready(out)

    # Pure-JAX f32 reference (same math as the PyTorch module).
    mean = x.mean(axis=0, keepdims=True)
    std = jnp.sqrt(((x - mean) ** 2).sum(axis=0, keepdims=True) / (B - 1))
    xn = (x - mean) / std
    z1 = xn @ w1 + b1
    ref = (z1 * z1) @ w2 + b2

    assert out.shape == (B, n_classes)
    # bf16 MXU operands -> slightly looser tolerance than pure f32.
    assert jnp.allclose(out, ref, atol=3e-2, rtol=3e-2), float(jnp.max(jnp.abs(out - ref)))

    print("KERNEL_OK")
</pallas_src>

<mosaic_0001>
module attributes {stable_mosaic.version = 11 : i64} {
  func.func @_stats_kernel(%arg0: i32, %arg1: memref<8x128xf32, #tpu.memory_space<vmem>>, %arg2: memref<1x128xf32, #tpu.memory_space<vmem>>, %arg3: memref<1x128xf32, #tpu.memory_space<vmem>>) attributes {dimension_semantics = [#tpu.dimension_semantics<arbitrary>], iteration_bounds = array<i64: 1>, scalar_prefetch = 0 : i64, scratch_operands = 0 : i64, tpu.core_type = #tpu.core_type<tc>, window_params = [{transform_indices = @transform_0, window_bounds = array<i64: 8, 128>}, {pipeline_mode = #tpu.pipeline_mode<synchronous>, transform_indices = @transform_1, window_bounds = array<i64: 1, 128>}, {pipeline_mode = #tpu.pipeline_mode<synchronous>, transform_indices = @transform_2, window_bounds = array<i64: 1, 128>}]} {
    %c0_i32 = arith.constant 0 : i32
    %0 = arith.cmpi eq, %arg0, %c0_i32 : i32
    %1 = arith.extui %0 : i1 to i32
    %c0_i32_0 = arith.constant 0 : i32
    %2 = arith.cmpi ne, %1, %c0_i32_0 : i32
    scf.if %2 {
      %cst_11 = arith.constant 0.000000e+00 : f32
      %15 = vector.broadcast %cst_11 : f32 to vector<1x128xf32>
      %c0_12 = arith.constant 0 : index
      %c0_13 = arith.constant 0 : index
      %16 = vector.load %arg2[%c0_12, %c0_13] : memref<1x128xf32, #tpu.memory_space<vmem>>, vector<1x128xf32>
      tpu.vector_store %arg2[%c0_12, %c0_13], %15 {strides = array<i32>} : memref<1x128xf32, #tpu.memory_space<vmem>>, vector<1x128xf32>,
      %cst_14 = arith.constant 0.000000e+00 : f32
      %17 = vector.broadcast %cst_14 : f32 to vector<1x128xf32>
      %c0_15 = arith.constant 0 : index
      %c0_16 = arith.constant 0 : index
      %18 = vector.load %arg3[%c0_15, %c0_16] : memref<1x128xf32, #tpu.memory_space<vmem>>, vector<1x128xf32>
      tpu.vector_store %arg3[%c0_15, %c0_16], %17 {strides = array<i32>} : memref<1x128xf32, #tpu.memory_space<vmem>>, vector<1x128xf32>,
    } else {
    }
    %c0 = arith.constant 0 : index
    %c0_1 = arith.constant 0 : index
    %3 = vector.load %arg1[%c0, %c0_1] : memref<8x128xf32, #tpu.memory_space<vmem>>, vector<8x128xf32>
    %c0_2 = arith.constant 0 : index
    %c0_3 = arith.constant 0 : index
    %4 = vector.load %arg2[%c0_2, %c0_3] : memref<1x128xf32, #tpu.memory_space<vmem>>, vector<1x128xf32>
    %cst = arith.constant dense<0.000000e+00> : vector<128xf32>
    %5 = vector.multi_reduction <add>, %3, %cst [0] : vector<8x128xf32> to vector<128xf32>
    %6 = vector.shape_cast %5 : vector<128xf32> to vector<1x128xf32>
    %7 = arith.addf %4, %6 : vector<1x128xf32>
    %c0_4 = arith.constant 0 : index
    %c0_5 = arith.constant 0 : index
    %8 = vector.load %arg2[%c0_4, %c0_5] : memref<1x128xf32, #tpu.memory_space<vmem>>, vector<1x128xf32>
    tpu.vector_store %arg2[%c0_4, %c0_5], %7 {strides = array<i32>} : memref<1x128xf32, #tpu.memory_space<vmem>>, vector<1x128xf32>,
    %c0_6 = arith.constant 0 : index
    %c0_7 = arith.constant 0 : index
    %9 = vector.load %arg3[%c0_6, %c0_7] : memref<1x128xf32, #tpu.memory_space<vmem>>, vector<1x128xf32>
    %10 = arith.mulf %3, %3 : vector<8x128xf32>
    %cst_8 = arith.constant dense<0.000000e+00> : vector<128xf32>
    %11 = vector.multi_reduction <add>, %10, %cst_8 [0] : vector<8x128xf32> to vector<128xf32>
    %12 = vector.shape_cast %11 : vector<128xf32> to vector<1x128xf32>
    %13 = arith.addf %9, %12 : vector<1x128xf32>
    %c0_9 = arith.constant 0 : index
    %c0_10 = arith.constant 0 : index
    %14 = vector.load %arg3[%c0_9, %c0_10] : memref<1x128xf32, #tpu.memory_space<vmem>>, vector<1x128xf32>
    tpu.vector_store %arg3[%c0_9, %c0_10], %13 {strides = array<i32>} : memref<1x128xf32, #tpu.memory_space<vmem>>, vector<1x128xf32>,
    return
  }
  func.func @transform_0(%arg0: i32) -> (i32, i32) {
    %c0_i32 = arith.constant 0 : i32
    %c0_i32_0 = arith.constant 0 : i32
    return %arg0, %c0_i32 : i32, i32
  }
  func.func @transform_1(%arg0: i32) -> (i32, i32) {
    %c0_i32 = arith.constant 0 : i32
    %c0_i32_0 = arith.constant 0 : i32
    %c0_i32_1 = arith.constant 0 : i32
    return %c0_i32, %c0_i32_0 : i32, i32
  }
  func.func @transform_2(%arg0: i32) -> (i32, i32) {
    %c0_i32 = arith.constant 0 : i32
    %c0_i32_0 = arith.constant 0 : i32
    %c0_i32_1 = arith.constant 0 : i32
    return %c0_i32, %c0_i32_0 : i32, i32
  }
}

</mosaic_0001>

<bundles_post_ra>
// kernel: tpu_custom_call.1
= control target key start
LH: loop header
LB: loop body
LE: loop exit
PB: predicated region body
PF: predicated region fallthrough
CT: control target
= control target key end

     0   :  { %8 = vsyncpa [#allocation3], 0  ;;  %s218_s0 = inlined_call_operand.hbm [shape: f32[8,128], index: 0, kind: input, shape index: {}]   ;;  %s219_s1 = inlined_call_operand.hbm [shape: f32[1,128], index: 1, kind: output, shape index: {0}]   ;;  %s220_s2 = inlined_call_operand.hbm [shape: f32[1,128], index: 2, kind: output, shape index: {1}]  }
   0x1   :  { %9 = vsyncpa [#allocation4], 0 }
   0x2   :  { %10 = vsyncpa [#allocation7], 0  ;;  %s155_s9 = smov [#allocation2]   ;;  %s83_s13 = scalar_lea.hbm %s218_s0, 128 }
   0x3   :  { %s17_s10 = sshll.u32 %s155_s9, 4  ;;  %p84_p0 = scmp.ne.s32.totalorder %s218_s0, %s83_s13  ;;  %s18_s10 = int_to_ptr.vmem [resolvable:$true] %s17_s10 }
   0x4   :  { %p87_p1 = scmp.lt.u32.totalorder %s83_s13, %s218_s0 }
   0x6   :  { %p89_p2 = pnand %p87_p1, %p84_p0 }
   0x8   :  { %92 = shalt.err (!%p89_p2)
}
   0x9   :  { %s93_s18 = scalar_lea.vmem %s18_s10, 128  ;;  %p98_p4 = scmp.lt.s32.totalorder %s18_s10, %s18_s10 }
   0xa   :  { %p94_p3 = scmp.ne.s32.totalorder %s18_s10, %s93_s18  ;;  %p99_p5 = scmp.lt.s32.totalorder %s93_s18, %s93_s18 }
   0xc   :  { %p100_p6 = por %p99_p5, %p98_p4 }
   0xe   :  { %p101_p7 = pnand %p100_p6, %p94_p3 }
  0x10   :  { %104 = shalt.err (!%p101_p7)
}
  0x11   :  { %20 = dma.hbm_to_vmem [thread:$0]  %s218_s0, 128, %s18_s10, [#allocation3]  }
  0x12   :  { %149 = dma.done.wait [#allocation3], 128  }
  0x13   :  { %150 = vsyncadd [#allocation3], 4294967168  ;;  %v156_v0 = vmov 0.0   ;;  %v30_v1 = vld [vmem:[#allocation2] sm:$0xff]  ;;  %s157_s21 = smov [#allocation5]   ;;  %s158_s0 = smov [#allocation6]  }
  0x14   :  { %28 = vst [vmem:[#allocation5] sm:$0x1] %v156_v0  ;;  %29 = vst [vmem:[#allocation6] sm:$0x1] %v156_v0  ;;  %v32_v2 = vrot.slane %v30_v1, 4  ;;  %v41_v3 = vmul.f32 %v30_v1, %v30_v1  ;;  %s56_s22 = sshll.u32 %s157_s21, 4  ;;  %s57_s22 = int_to_ptr.vmem [resolvable:$true] %s56_s22 }
  0x15   :  { %s66_s23 = sshll.u32 %s158_s0, 4  ;;  %s105_s24 = scalar_lea.vmem %s57_s22, 16  ;;  %s186_s23 = int_to_ptr.vmem [resolvable:$true] %s66_s23 }
  0x16   :  { %v33_v4 = vadd.f32 %v32_v2, %v30_v1  ;;  %v42_v5 = vrot.slane %v41_v3, 4  ;;  %p106_p8 = scmp.ne.s32.totalorder %s57_s22, %s105_s24  ;;  %s109_s25 = scalar_lea.vmem %s57_s22, 32 }
  0x17   :  { %p110_p9 = scmp.lt.s32.totalorder %s57_s22, %s57_s22  ;;  %p111_p10 = scmp.lt.s32.totalorder %s109_s25, %s105_s24 }
  0x18   :  { %v34_v6 = vrot.slane %v33_v4, 2  ;;  %v43_v7 = vadd.f32 %v42_v5, %v41_v3 }
  0x19   :  { %p112_p11 = por %p111_p10, %p110_p9 }
  0x1a   :  { %v35_v8 = vadd.f32 %v34_v6, %v33_v4  ;;  %v44_v9 = vrot.slane %v43_v7, 2 }
  0x1b   :  { %v31_v12 = vld [vmem:[#allocation5] sm:$0x1]  ;;  %v40_v15 = vld [vmem:[#allocation6] sm:$0x1]  ;;  %p113_p12 = pnand %p112_p11, %p106_p8 }
  0x1c   :  { %v36_v10 = vrot.slane %v35_v8, 1  ;;  %v45_v11 = vadd.f32 %v44_v9, %v43_v7 }
  0x1e   :  { %v37_v13 = vadd.f32 %v36_v10, %v35_v8  ;;  %v46_v14 = vrot.slane %v45_v11, 1 }
  0x20   :  { %v38_v16 = vadd.f32 %v37_v13, %v31_v12  ;;  %v47_v17 = vadd.f32 %v46_v14, %v45_v11 }
  0x22   :  { %39 = vst [vmem:[#allocation5] sm:$0x1] %v38_v16  ;;  %v48_v18 = vadd.f32 %v47_v17, %v40_v15 }
  0x23   :  { %116 = shalt.err (!%p113_p12)
}
  0x24   :  { %s117_s28 = scalar_lea.hbm %s219_s1, 16 }
  0x25   :  { %p118_p13 = scmp.ne.s32.totalorder %s219_s1, %s117_s28  ;;  %p121_p0 = scmp.lt.u32.totalorder %s117_s28, %s219_s1 }
  0x27   :  { %p123_p1 = pnand %p121_p0, %p118_p13 }
  0x29   :  { %126 = shalt.err (!%p123_p1)
}
  0x2a   :  { %59 = dma.vmem_to_hbm [thread:$0]  %s57_s22, 16, %s219_s1, [#allocation4]   ;;  %49 = vst [vmem:[#allocation6] sm:$0x1] %v48_v18 }
  0x2b   :  { %s127_s7 = scalar_lea.vmem %s186_s23, 16  ;;  %s131_s8 = scalar_lea.vmem %s186_s23, 32 }
  0x2c   :  { %p128_p2 = scmp.ne.s32.totalorder %s186_s23, %s127_s7  ;;  %p132_p3 = scmp.lt.s32.totalorder %s186_s23, %s186_s23 }
  0x2d   :  { %p133_p4 = scmp.lt.s32.totalorder %s131_s8, %s127_s7 }
  0x2f   :  { %p134_p5 = por %p133_p4, %p132_p3 }
  0x31   :  { %p135_p6 = pnand %p134_p5, %p128_p2 }
  0x33   :  { %138 = shalt.err (!%p135_p6)
}
  0x34   :  { %s139_s11 = scalar_lea.hbm %s220_s2, 16 }
  0x35   :  { %p140_p7 = scmp.ne.s32.totalorder %s220_s2, %s139_s11  ;;  %p143_p8 = scmp.lt.u32.totalorder %s139_s11, %s220_s2 }
  0x37   :  { %p145_p9 = pnand %p143_p8, %p140_p7 }
  0x39   :  { %148 = shalt.err (!%p145_p9)
}
  0x3a   :  { %69 = dma.vmem_to_hbm [thread:$0]  %s186_s23, 16, %s220_s2, [#allocation7]  }
  0x3b   :  { %151 = dma.done.wait [#allocation4], 16  }
  0x3c   :  { %152 = vsyncadd [#allocation4], 4294967280 }
  0x3d   :  { %153 = dma.done.wait [#allocation7], 16  }
  0x3e   :  { %154 = vsyncadd [#allocation7], 4294967280 }
  0x3f   :  { %76 = vsyncpa [#allocation3], 1 }
  0x40   :  { %77 = vsyncpa [#allocation4], 1 }
  0x41   :  { %78 = vsyncpa [#allocation7], 1 }

</bundles_post_ra>
